<compile_context>
chip_gen: v6e
topology: v6e:2x2x1
jax: 0.10.0
libtpu: 0.0.40
codegen_flags: <defaults>
</compile_context>

<pallas_src>
import functools

import jax
import jax.numpy as jnp
from jax.experimental import pallas as pl
from jax.experimental.pallas import tpu as pltpu

LANE = 128  # every feature axis is zero-padded to one full vreg lane width


# ----------------------------- Pallas kernel --------------------------------

def _gcn_fused_kernel(emb_ref, a0_ref, a1_ref, w1_ref, w2_ref, side_ref, o_ref):
    """Whole GCN forward in one kernel; intermediates never leave VMEM/vregs.

    x0  = mean_k emb[k]                                  (word/item mean pooling)
    h1  = relu( dd0 * (A0 @ (scale0 * x0)) @ W1 + b1 )   GraphConv 1, norm='both'
    out = relu( dd1 * (A1 @ (ds1 * (h1 @ W2))) + b2 )    GraphConv 2 (reassociated)

    side_ref packs every tiny side operand into one slab (static offsets):
      rows [0:NR), col 0 -> ds0 / IW   (src-degree scale with 1/IW mean folded in)
      rows [0:NR), col 1 -> dd0        (dst-degree scale, layer 1)
      rows [0:NR), col 2 -> ds1        (src-degree scale, layer 2)
      rows [0:NR), col 3 -> dd1        (dst-degree scale, layer 2)
      row  NR            -> b1 (128-lane padded)
      row  NR+1          -> b2 (128-lane padded)
    """
    f32, bf16 = jnp.float32, jnp.bfloat16
    iw = emb_ref.shape[0]
    d0, s0 = a0_ref.shape
    d1, s1 = a1_ref.shape
    nr = side_ref.shape[0] - 2

    scale0 = side_ref[0:s0, 0:1]          # (S0, 1)  ds0 / IW
    dd0 = side_ref[0:d0, 1:2]             # (D0, 1)
    ds1 = side_ref[0:s1, 2:3]             # (S1, 1)
    dd1 = side_ref[0:d1, 3:4]             # (D1, 1)
    b1 = side_ref[nr:nr + 1, :]           # (1, 128)
    b2 = side_ref[nr + 1:nr + 2, :]       # (1, 128)

    # 1) mean-pool words/items: unrolled VPU accumulation over the leading
    #    axis (no dense pooling matrix, no XLU reduce); 1/IW rides in scale0.
    x0 = emb_ref[0].astype(f32)
    for k in range(1, iw):                                               # static
        x0 = x0 + emb_ref[k].astype(f32)                                 # (S0, 128)
    xs = (x0 * scale0).astype(bf16)

    # 2) GraphConv 1:  dd0 * (A0 @ (ds0 * x0)) @ W1 + b1, ReLU (f32 VPU ops).
    agg0 = jnp.dot(a0_ref[...], xs, preferred_element_type=f32) * dd0    # (D0, 128)
    h1 = jnp.dot(agg0.astype(bf16), w1_ref[...], preferred_element_type=f32)
    h1 = jnp.maximum(h1 + b1, 0.0)                                       # (D0, 128)

    # 3) GraphConv 2 reassociated as A1 @ (h1 @ W2) (out_size < hidden); the
    #    lane-padded W2/b2 keep the final store unmasked / lane-dense.
    hw = jnp.dot(h1.astype(bf16), w2_ref[...], preferred_element_type=f32)
    hw = (hw * ds1).astype(bf16)                                         # (S1, 128)
    agg1 = jnp.dot(a1_ref[...], hw, preferred_element_type=f32) * dd1    # (D1, 128)
    o_ref[...] = jnp.maximum(agg1 + b2, 0.0)


# ------------------------------- JAX glue ------------------------------------

def _inv_sqrt_degrees(adj):
    # DGL GraphConv norm='both' (degrees clamped at 1 for isolated nodes).
    deg_src = jnp.clip(jnp.sum(adj, axis=0), 1.0, None)   # out-degree of src
    deg_dst = jnp.clip(jnp.sum(adj, axis=1), 1.0, None)   # in-degree of dst
    return deg_src ** -0.5, deg_dst ** -0.5


def xavier_uniform(key, fan_in, fan_out):
    limit = (6.0 / (fan_in + fan_out)) ** 0.5
    return jax.random.uniform(key, (fan_in, fan_out), jnp.float32, -limit, limit)


@functools.partial(jax.jit, static_argnames=("num_final_dst",))
def gcn_forward(params, user_word, word_feature_table, adj0, adj1, labels,
                num_final_dst):
    s0, n_items, n_words = user_word.shape
    iw = n_items * n_words
    d_in = word_feature_table.shape[1]
    h = params["w1"].shape[1]
    f_out = params["w2"].shape[1]
    d0 = adj0.shape[0]
    d1, s1 = adj1.shape
    assert d_in <= LANE and h <= LANE and f_out <= LANE

    # Frozen-embedding gather (data-dependent, plain JAX), zero-padded to 128
    # lanes, laid out (IW, S0, 128) so the in-kernel mean is a per-slab sum.
    table_p = (jnp.zeros((word_feature_table.shape[0], LANE), jnp.float32)
               .at[:, :d_in].set(word_feature_table))
    wf = table_p[user_word.reshape(s0, iw)]                    # (S0, IW, 128)
    emb = jnp.transpose(wf, (1, 0, 2)).astype(jnp.bfloat16)    # (IW, S0, 128)

    # Degree scaling vectors (norm='both'); the 1/IW mean constant is folded
    # into the layer-1 src scale so pooling-norm + graph-norm is one multiply.
    ds0, dd0 = _inv_sqrt_degrees(adj0)
    ds1, dd1 = _inv_sqrt_degrees(adj1)

    # Pack all six tiny side operands into one lane-dense slab (fewer DMAs).
    nr = ((max(s0, d0, s1, d1) + 7) // 8) * 8
    side = jnp.zeros((nr + 2, LANE), jnp.float32)
    side = side.at[:s0, 0].set(ds0 / iw)
    side = side.at[:d0, 1].set(dd0)
    side = side.at[:s1, 2].set(ds1)
    side = side.at[:d1, 3].set(dd1)
    side = side.at[nr, :h].set(params["b1"])
    side = side.at[nr + 1, :f_out].set(params["b2"])

    # Lane-pad weights so every matmul / VPU op in the kernel is 128-lane dense.
    w1p = (jnp.zeros((LANE, LANE), jnp.float32)
           .at[:d_in, :h].set(params["w1"])).astype(jnp.bfloat16)
    w2p = (jnp.zeros((LANE, LANE), jnp.float32)
           .at[:h, :f_out].set(params["w2"])).astype(jnp.bfloat16)

    # TODO(synk): at real graph sizes store A as int8 (v5e/v6e) / fp8 e4m3
    # (v7x) in HBM and widen in VMEM; 0/1 is exact and A@X is HBM-bound.
    a0 = adj0.astype(jnp.bfloat16)
    a1 = adj1.astype(jnp.bfloat16)

    def full(shape):
        return pl.BlockSpec(shape, lambda i, _n=len(shape): (0,) * _n)

    flops = int(2 * (d0 * s0 * LANE + d0 * LANE * LANE
                     + d0 * LANE * LANE + d1 * s1 * LANE)
                + iw * s0 * LANE + 3 * d0 * LANE + 2 * d1 * LANE)
    bytes_accessed = int(emb.size * 2 + a0.size * 2 + a1.size * 2
                         + w1p.size * 2 + w2p.size * 2 + side.size * 4
                         + d1 * LANE * 4)

    # TODO(synk): at real graph sizes replace grid=(1,) with a (dst, src)-tiled
    # grid: dst axis "parallel" (v7x has 2 TCs), src axis last/"arbitrary" with
    # an f32 VMEM accumulator (P3), tiles budgeted per-generation VMEM (64 MiB
    # physical on v7x) and pl.Buffered(3) on the streaming adjacency operand.
    out = pl.pallas_call(
        _gcn_fused_kernel,
        out_shape=jax.ShapeDtypeStruct((d1, LANE), jnp.float32),
        grid=(1,),
        in_specs=[full(emb.shape), full(a0.shape), full(a1.shape),
                  full(w1p.shape), full(w2p.shape), full(side.shape)],
        out_specs=full((d1, LANE)),
        compiler_params=pltpu.CompilerParams(
            dimension_semantics=("arbitrary",)),
        cost_estimate=pl.CostEstimate(flops=flops, transcendentals=0,
                                      bytes_accessed=bytes_accessed),
    )(emb, a0, a1, w1p, w2p, side)

    x = out[:num_final_dst, :f_out]   # x[:blocks[-1].num_dst_nodes()], drop pad
    return x, labels


# --------------------------------- main --------------------------------------

if __name__ == "__main__":
    key = jax.random.PRNGKey(0)
    k_emb, k_idx, k_a0, k_a1, k_w1, k_w2, k_lab = jax.random.split(key, 7)

    # Sizes implied by the module's forward pass.
    in_size, hidden_size, out_size = 32, 32, 8
    vocab, emb_dim = 20, in_size
    n_src0, n_dst0 = 16, 12          # block[0]: src -> dst
    n_src1, n_dst1 = n_dst0, 8       # block[1]: src -> dst (dst prefix of src)
    n_items, n_words = 3, 5

    # Frozen embedding table (word_feature passed to __init__).
    word_feature_table = jax.random.normal(k_emb, (vocab, emb_dim), jnp.float32)
    # blocks[0].srcdata['all_word']: integer word ids per (user, item, word).
    user_word = jax.random.randint(k_idx, (n_src0, n_items, n_words), 0, vocab)

    # Dense block adjacencies (A[dst, src]); DGL blocks carry edges src->dst.
    adj0 = (jax.random.uniform(k_a0, (n_dst0, n_src0)) < 0.4).astype(jnp.float32)
    adj1 = (jax.random.uniform(k_a1, (n_dst1, n_src1)) < 0.4).astype(jnp.float32)
    # Guarantee every node participates (self-edge onto matching prefix index).
    adj0 = jnp.maximum(adj0, jnp.eye(n_dst0, n_src0, dtype=jnp.float32))
    adj1 = jnp.maximum(adj1, jnp.eye(n_dst1, n_src1, dtype=jnp.float32))

    # blocks[-1].dstdata[label_key]
    labels = jax.random.randint(k_lab, (n_dst1,), 0, out_size)

    # GraphConv params: xavier_uniform weight, zero bias (DGL defaults).
    params = {
        "w1": xavier_uniform(k_w1, in_size, hidden_size),
        "b1": jnp.zeros((hidden_size,), jnp.float32),
        "w2": xavier_uniform(k_w2, hidden_size, out_size),
        "b2": jnp.zeros((out_size,), jnp.float32),
    }

    x_out, labels_out = gcn_forward(params, user_word, word_feature_table,
                                    adj0, adj1, labels, num_final_dst=n_dst1)
    jax.block_until_ready((x_out, labels_out))
    assert x_out.shape == (n_dst1, out_size)
    assert labels_out.shape == (n_dst1,)
    print("KERNEL_OK")
</pallas_src>

<mosaic_0001>
module attributes {stable_mosaic.version = 11 : i64} {
  func.func @_gcn_fused_kernel(%arg0: i32, %arg1: memref<15x16x128xbf16, #tpu.memory_space<vmem>>, %arg2: memref<12x16xbf16, #tpu.memory_space<vmem>>, %arg3: memref<8x12xbf16, #tpu.memory_space<vmem>>, %arg4: memref<128x128xbf16, #tpu.memory_space<vmem>>, %arg5: memref<128x128xbf16, #tpu.memory_space<vmem>>, %arg6: memref<18x128xf32, #tpu.memory_space<vmem>>, %arg7: memref<8x128xf32, #tpu.memory_space<vmem>>) attributes {dimension_semantics = [#tpu.dimension_semantics<arbitrary>], iteration_bounds = array<i64: 1>, scalar_prefetch = 0 : i64, scratch_operands = 0 : i64, tpu.core_type = #tpu.core_type<tc>, window_params = [{pipeline_mode = #tpu.pipeline_mode<synchronous>, transform_indices = @transform_0, window_bounds = array<i64: 15, 16, 128>}, {pipeline_mode = #tpu.pipeline_mode<synchronous>, transform_indices = @transform_1, window_bounds = array<i64: 12, 16>}, {pipeline_mode = #tpu.pipeline_mode<synchronous>, transform_indices = @transform_2, window_bounds = array<i64: 8, 12>}, {pipeline_mode = #tpu.pipeline_mode<synchronous>, transform_indices = @transform_3, window_bounds = array<i64: 128, 128>}, {pipeline_mode = #tpu.pipeline_mode<synchronous>, transform_indices = @transform_4, window_bounds = array<i64: 128, 128>}, {pipeline_mode = #tpu.pipeline_mode<synchronous>, transform_indices = @transform_5, window_bounds = array<i64: 18, 128>}, {pipeline_mode = #tpu.pipeline_mode<synchronous>, transform_indices = @transform_6, window_bounds = array<i64: 8, 128>}]} {
    %c0 = arith.constant 0 : index
    %c0_0 = arith.constant 0 : index
    %0 = vector.load %arg6[%c0, %c0_0] : memref<18x128xf32, #tpu.memory_space<vmem>>, vector<16x1xf32>
    %c0_1 = arith.constant 0 : index
    %c1 = arith.constant 1 : index
    %1 = vector.load %arg6[%c0_1, %c1] : memref<18x128xf32, #tpu.memory_space<vmem>>, vector<12x1xf32>
    %c0_2 = arith.constant 0 : index
    %c2 = arith.constant 2 : index
    %2 = vector.load %arg6[%c0_2, %c2] : memref<18x128xf32, #tpu.memory_space<vmem>>, vector<12x1xf32>
    %c0_3 = arith.constant 0 : index
    %c3 = arith.constant 3 : index
    %3 = vector.load %arg6[%c0_3, %c3] : memref<18x128xf32, #tpu.memory_space<vmem>>, vector<8x1xf32>
    %c16 = arith.constant 16 : index
    %c0_4 = arith.constant 0 : index
    %4 = vector.load %arg6[%c16, %c0_4] : memref<18x128xf32, #tpu.memory_space<vmem>>, vector<1x128xf32>
    %c17 = arith.constant 17 : index
    %c0_5 = arith.constant 0 : index
    %5 = vector.load %arg6[%c17, %c0_5] : memref<18x128xf32, #tpu.memory_space<vmem>>, vector<1x128xf32>
    %c0_6 = arith.constant 0 : index
    %c0_7 = arith.constant 0 : index
    %c0_8 = arith.constant 0 : index
    %6 = vector.load %arg1[%c0_6, %c0_7, %c0_8] : memref<15x16x128xbf16, #tpu.memory_space<vmem>>, vector<1x16x128xbf16>
    %7 = vector.shape_cast %6 : vector<1x16x128xbf16> to vector<16x128xbf16>
    %8 = arith.extf %7 : vector<16x128xbf16> to vector<16x128xf32>
    %c1_9 = arith.constant 1 : index
    %c0_10 = arith.constant 0 : index
    %c0_11 = arith.constant 0 : index
    %9 = vector.load %arg1[%c1_9, %c0_10, %c0_11] : memref<15x16x128xbf16, #tpu.memory_space<vmem>>, vector<1x16x128xbf16>
    %10 = vector.shape_cast %9 : vector<1x16x128xbf16> to vector<16x128xbf16>
    %11 = arith.extf %10 : vector<16x128xbf16> to vector<16x128xf32>
    %12 = arith.addf %8, %11 : vector<16x128xf32>
    %c2_12 = arith.constant 2 : index
    %c0_13 = arith.constant 0 : index
    %c0_14 = arith.constant 0 : index
    %13 = vector.load %arg1[%c2_12, %c0_13, %c0_14] : memref<15x16x128xbf16, #tpu.memory_space<vmem>>, vector<1x16x128xbf16>
    %14 = vector.shape_cast %13 : vector<1x16x128xbf16> to vector<16x128xbf16>
    %15 = arith.extf %14 : vector<16x128xbf16> to vector<16x128xf32>
    %16 = arith.addf %12, %15 : vector<16x128xf32>
    %c3_15 = arith.constant 3 : index
    %c0_16 = arith.constant 0 : index
    %c0_17 = arith.constant 0 : index
    %17 = vector.load %arg1[%c3_15, %c0_16, %c0_17] : memref<15x16x128xbf16, #tpu.memory_space<vmem>>, vector<1x16x128xbf16>
    %18 = vector.shape_cast %17 : vector<1x16x128xbf16> to vector<16x128xbf16>
    %19 = arith.extf %18 : vector<16x128xbf16> to vector<16x128xf32>
    %20 = arith.addf %16, %19 : vector<16x128xf32>
    %c4 = arith.constant 4 : index
    %c0_18 = arith.constant 0 : index
    %c0_19 = arith.constant 0 : index
    %21 = vector.load %arg1[%c4, %c0_18, %c0_19] : memref<15x16x128xbf16, #tpu.memory_space<vmem>>, vector<1x16x128xbf16>
    %22 = vector.shape_cast %21 : vector<1x16x128xbf16> to vector<16x128xbf16>
    %23 = arith.extf %22 : vector<16x128xbf16> to vector<16x128xf32>
    %24 = arith.addf %20, %23 : vector<16x128xf32>
    %c5 = arith.constant 5 : index
    %c0_20 = arith.constant 0 : index
    %c0_21 = arith.constant 0 : index
    %25 = vector.load %arg1[%c5, %c0_20, %c0_21] : memref<15x16x128xbf16, #tpu.memory_space<vmem>>, vector<1x16x128xbf16>
    %26 = vector.shape_cast %25 : vector<1x16x128xbf16> to vector<16x128xbf16>
    %27 = arith.extf %26 : vector<16x128xbf16> to vector<16x128xf32>
    %28 = arith.addf %24, %27 : vector<16x128xf32>
    %c6 = arith.constant 6 : index
    %c0_22 = arith.constant 0 : index
    %c0_23 = arith.constant 0 : index
    %29 = vector.load %arg1[%c6, %c0_22, %c0_23] : memref<15x16x128xbf16, #tpu.memory_space<vmem>>, vector<1x16x128xbf16>
    %30 = vector.shape_cast %29 : vector<1x16x128xbf16> to vector<16x128xbf16>
    %31 = arith.extf %30 : vector<16x128xbf16> to vector<16x128xf32>
    %32 = arith.addf %28, %31 : vector<16x128xf32>
    %c7 = arith.constant 7 : index
    %c0_24 = arith.constant 0 : index
    %c0_25 = arith.constant 0 : index
    %33 = vector.load %arg1[%c7, %c0_24, %c0_25] : memref<15x16x128xbf16, #tpu.memory_space<vmem>>, vector<1x16x128xbf16>
    %34 = vector.shape_cast %33 : vector<1x16x128xbf16> to vector<16x128xbf16>
    %35 = arith.extf %34 : vector<16x128xbf16> to vector<16x128xf32>
    %36 = arith.addf %32, %35 : vector<16x128xf32>
    %c8 = arith.constant 8 : index
    %c0_26 = arith.constant 0 : index
    %c0_27 = arith.constant 0 : index
    %37 = vector.load %arg1[%c8, %c0_26, %c0_27] : memref<15x16x128xbf16, #tpu.memory_space<vmem>>, vector<1x16x128xbf16>
    %38 = vector.shape_cast %37 : vector<1x16x128xbf16> to vector<16x128xbf16>
    %39 = arith.extf %38 : vector<16x128xbf16> to vector<16x128xf32>
    %40 = arith.addf %36, %39 : vector<16x128xf32>
    %c9 = arith.constant 9 : index
    %c0_28 = arith.constant 0 : index
    %c0_29 = arith.constant 0 : index
    %41 = vector.load %arg1[%c9, %c0_28, %c0_29] : memref<15x16x128xbf16, #tpu.memory_space<vmem>>, vector<1x16x128xbf16>
    %42 = vector.shape_cast %41 : vector<1x16x128xbf16> to vector<16x128xbf16>
    %43 = arith.extf %42 : vector<16x128xbf16> to vector<16x128xf32>
    %44 = arith.addf %40, %43 : vector<16x128xf32>
    %c10 = arith.constant 10 : index
    %c0_30 = arith.constant 0 : index
    %c0_31 = arith.constant 0 : index
    %45 = vector.load %arg1[%c10, %c0_30, %c0_31] : memref<15x16x128xbf16, #tpu.memory_space<vmem>>, vector<1x16x128xbf16>
    %46 = vector.shape_cast %45 : vector<1x16x128xbf16> to vector<16x128xbf16>
    %47 = arith.extf %46 : vector<16x128xbf16> to vector<16x128xf32>
    %48 = arith.addf %44, %47 : vector<16x128xf32>
    %c11 = arith.constant 11 : index
    %c0_32 = arith.constant 0 : index
    %c0_33 = arith.constant 0 : index
    %49 = vector.load %arg1[%c11, %c0_32, %c0_33] : memref<15x16x128xbf16, #tpu.memory_space<vmem>>, vector<1x16x128xbf16>
    %50 = vector.shape_cast %49 : vector<1x16x128xbf16> to vector<16x128xbf16>
    %51 = arith.extf %50 : vector<16x128xbf16> to vector<16x128xf32>
    %52 = arith.addf %48, %51 : vector<16x128xf32>
    %c12 = arith.constant 12 : index
    %c0_34 = arith.constant 0 : index
    %c0_35 = arith.constant 0 : index
    %53 = vector.load %arg1[%c12, %c0_34, %c0_35] : memref<15x16x128xbf16, #tpu.memory_space<vmem>>, vector<1x16x128xbf16>
    %54 = vector.shape_cast %53 : vector<1x16x128xbf16> to vector<16x128xbf16>
    %55 = arith.extf %54 : vector<16x128xbf16> to vector<16x128xf32>
    %56 = arith.addf %52, %55 : vector<16x128xf32>
    %c13 = arith.constant 13 : index
    %c0_36 = arith.constant 0 : index
    %c0_37 = arith.constant 0 : index
    %57 = vector.load %arg1[%c13, %c0_36, %c0_37] : memref<15x16x128xbf16, #tpu.memory_space<vmem>>, vector<1x16x128xbf16>
    %58 = vector.shape_cast %57 : vector<1x16x128xbf16> to vector<16x128xbf16>
    %59 = arith.extf %58 : vector<16x128xbf16> to vector<16x128xf32>
    %60 = arith.addf %56, %59 : vector<16x128xf32>
    %c14 = arith.constant 14 : index
    %c0_38 = arith.constant 0 : index
    %c0_39 = arith.constant 0 : index
    %61 = vector.load %arg1[%c14, %c0_38, %c0_39] : memref<15x16x128xbf16, #tpu.memory_space<vmem>>, vector<1x16x128xbf16>
    %62 = vector.shape_cast %61 : vector<1x16x128xbf16> to vector<16x128xbf16>
    %63 = arith.extf %62 : vector<16x128xbf16> to vector<16x128xf32>
    %64 = arith.addf %60, %63 : vector<16x128xf32>
    %65 = vector.broadcast %0 : vector<16x1xf32> to vector<16x128xf32>
    %66 = arith.mulf %64, %65 : vector<16x128xf32>
    %67 = arith.truncf %66 : vector<16x128xf32> to vector<16x128xbf16>
    %c0_40 = arith.constant 0 : index
    %c0_41 = arith.constant 0 : index
    %68 = vector.load %arg2[%c0_40, %c0_41] : memref<12x16xbf16, #tpu.memory_space<vmem>>, vector<12x16xbf16>
    %cst = arith.constant dense<0.000000e+00> : vector<12x128xf32>
    %69 = tpu.matmul %68, %67, %cst {dimension_numbers = #tpu.dot_dimension_numbers<[1], [0], [0], [1], [0, 0, 1, 1], [], []>} : vector<12x16xbf16>, vector<16x128xbf16>, vector<12x128xf32> -> vector<12x128xf32>
    %70 = vector.broadcast %1 : vector<12x1xf32> to vector<12x128xf32>
    %71 = arith.mulf %69, %70 : vector<12x128xf32>
    %72 = arith.truncf %71 : vector<12x128xf32> to vector<12x128xbf16>
    %c0_42 = arith.constant 0 : index
    %c0_43 = arith.constant 0 : index
    %73 = vector.load %arg4[%c0_42, %c0_43] : memref<128x128xbf16, #tpu.memory_space<vmem>>, vector<128x128xbf16>
    %cst_44 = arith.constant dense<0.000000e+00> : vector<12x128xf32>
    %74 = tpu.matmul %72, %73, %cst_44 {dimension_numbers = #tpu.dot_dimension_numbers<[1], [0], [0], [1], [0, 0, 1, 1], [], []>} : vector<12x128xbf16>, vector<128x128xbf16>, vector<12x128xf32> -> vector<12x128xf32>
    %75 = vector.broadcast %4 : vector<1x128xf32> to vector<12x128xf32>
    %76 = arith.addf %74, %75 : vector<12x128xf32>
    %cst_45 = arith.constant 0.000000e+00 : f32
    %77 = vector.broadcast %cst_45 : f32 to vector<12x128xf32>
    %78 = arith.maximumf %76, %77 : vector<12x128xf32>
    %79 = arith.truncf %78 : vector<12x128xf32> to vector<12x128xbf16>
    %c0_46 = arith.constant 0 : index
    %c0_47 = arith.constant 0 : index
    %80 = vector.load %arg5[%c0_46, %c0_47] : memref<128x128xbf16, #tpu.memory_space<vmem>>, vector<128x128xbf16>
    %cst_48 = arith.constant dense<0.000000e+00> : vector<12x128xf32>
    %81 = tpu.matmul %79, %80, %cst_48 {dimension_numbers = #tpu.dot_dimension_numbers<[1], [0], [0], [1], [0, 0, 1, 1], [], []>} : vector<12x128xbf16>, vector<128x128xbf16>, vector<12x128xf32> -> vector<12x128xf32>
    %82 = vector.broadcast %2 : vector<12x1xf32> to vector<12x128xf32>
    %83 = arith.mulf %81, %82 : vector<12x128xf32>
    %84 = arith.truncf %83 : vector<12x128xf32> to vector<12x128xbf16>
    %c0_49 = arith.constant 0 : index
    %c0_50 = arith.constant 0 : index
    %85 = vector.load %arg3[%c0_49, %c0_50] : memref<8x12xbf16, #tpu.memory_space<vmem>>, vector<8x12xbf16>
    %cst_51 = arith.constant dense<0.000000e+00> : vector<8x128xf32>
    %86 = tpu.matmul %85, %84, %cst_51 {dimension_numbers = #tpu.dot_dimension_numbers<[1], [0], [0], [1], [0, 0, 1, 1], [], []>} : vector<8x12xbf16>, vector<12x128xbf16>, vector<8x128xf32> -> vector<8x128xf32>
    %87 = vector.broadcast %3 : vector<8x1xf32> to vector<8x128xf32>
    %88 = arith.mulf %86, %87 : vector<8x128xf32>
    %89 = vector.broadcast %5 : vector<1x128xf32> to vector<8x128xf32>
    %90 = arith.addf %88, %89 : vector<8x128xf32>
    %cst_52 = arith.constant 0.000000e+00 : f32
    %91 = vector.broadcast %cst_52 : f32 to vector<8x128xf32>
    %92 = arith.maximumf %90, %91 : vector<8x128xf32>
    %c0_53 = arith.constant 0 : index
    %c0_54 = arith.constant 0 : index
    %93 = vector.load %arg7[%c0_53, %c0_54] : memref<8x128xf32, #tpu.memory_space<vmem>>, vector<8x128xf32>
    tpu.vector_store %arg7[%c0_53, %c0_54], %92 {strides = array<i32>} : memref<8x128xf32, #tpu.memory_space<vmem>>, vector<8x128xf32>,
    return
  }
  func.func @transform_0(%arg0: i32) -> (i32, i32, i32) {
    %c0_i32 = arith.constant 0 : i32
    %c0_i32_0 = arith.constant 0 : i32
    %c0_i32_1 = arith.constant 0 : i32
    %c0_i32_2 = arith.constant 0 : i32
    return %c0_i32, %c0_i32_0, %c0_i32_1 : i32, i32, i32
  }
  func.func @transform_1(%arg0: i32) -> (i32, i32) {
    %c0_i32 = arith.constant 0 : i32
    %c0_i32_0 = arith.constant 0 : i32
    %c0_i32_1 = arith.constant 0 : i32
    return %c0_i32, %c0_i32_0 : i32, i32
  }
  func.func @transform_2(%arg0: i32) -> (i32, i32) {
    %c0_i32 = arith.constant 0 : i32
    %c0_i32_0 = arith.constant 0 : i32
    %c0_i32_1 = arith.constant 0 : i32
    return %c0_i32, %c0_i32_0 : i32, i32
  }
  func.func @transform_3(%arg0: i32) -> (i32, i32) {
    %c0_i32 = arith.constant 0 : i32
    %c0_i32_0 = arith.constant 0 : i32
    %c0_i32_1 = arith.constant 0 : i32
    return %c0_i32, %c0_i32_0 : i32, i32
  }
  func.func @transform_4(%arg0: i32) -> (i32, i32) {
    %c0_i32 = arith.constant 0 : i32
    %c0_i32_0 = arith.constant 0 : i32
    %c0_i32_1 = arith.constant 0 : i32
    return %c0_i32, %c0_i32_0 : i32, i32
  }
  func.func @transform_5(%arg0: i32) -> (i32, i32) {
    %c0_i32 = arith.constant 0 : i32
    %c0_i32_0 = arith.constant 0 : i32
    %c0_i32_1 = arith.constant 0 : i32
    return %c0_i32, %c0_i32_0 : i32, i32
  }
  func.func @transform_6(%arg0: i32) -> (i32, i32) {
    %c0_i32 = arith.constant 0 : i32
    %c0_i32_0 = arith.constant 0 : i32
    %c0_i32_1 = arith.constant 0 : i32
    return %c0_i32, %c0_i32_0 : i32, i32
  }
}

</mosaic_0001>

<bundles_post_ra>
// kernel: gcn_forward.1
= control target key start
LH: loop header
LB: loop body
LE: loop exit
PB: predicated region body
PF: predicated region fallthrough
CT: control target
= control target key end

     0   :  { %v761_v1 = vmov 0   ;;  %v762_v4 = vmov 0.0   ;;  %vm763_vm0 = vmmov 0   ;;  %v764_v5 = vmov 1   ;;  %s956_s0 = inlined_call_operand.vmem [shape: bf16[15,16,128], index: 0, kind: input, shape index: {}]   ;;  %s957_s1 = inlined_call_operand.vmem [shape: bf16[12,16], index: 1, kind: input, shape index: {}]   ;;  %s958_s2 = inlined_call_operand.vmem [shape: bf16[8,12], index: 2, kind: input, shape index: {}]   ;;  %s959_s3 = inlined_call_operand.vmem [shape: bf16[128,128], index: 3, kind: input, shape index: {}]   ;;  %s960_s4 = inlined_call_operand.vmem [shape: bf16[128,128], index: 4, kind: input, shape index: {}]   ;;  %s961_s5 = inlined_call_operand.vmem [shape: f32[18,128], index: 5, kind: input, shape index: {}]   ;;  %s962_s6 = inlined_call_operand.hbm [shape: f32[8,128], index: 6, kind: output, shape index: {}]  }
   0x1   :  { %v806_v0 = vld [vmem:[%s961_s5] sm:$0xff]  ;;  %716 = vset.pattern.permute.xlu0 %v761_v1  ;;  %v26_v2 = vld [vmem:[%s961_s5 + $0x8] sm:$0xff]  ;;  %v723_v3 = vld [vmem:[%s959_s3 + $0x38] sm:$0xff]   ;;  %657 = vmatprep.subr.bf16.mxu0 %v762_v4 }
   0x2   :  { %134 = vperm.xlu0 %716, %v806_v0   ;;  %663 = vmatprep.subr.bf16.mxu1 %v762_v4  ;;  %v822_v6 = vld [vmem:[%s961_s5 + $0x8] sm:$0xf]  ;;  %v724_v7 = vld [vmem:[%s959_s3 + $0x30] sm:$0xff]  }
   0x3   :  { %659 = vmatprep.mubr.msk.bf16.mxu0 %vm763_vm0, %v762_v4  ;;  %717 = vset.pattern.permute.xlu1 %v764_v5  ;;  %v725_v8 = vld [vmem:[%s959_s3 + $0x28] sm:$0xff]  }
   0x4   :  { %198 = vperm.xlu1 %717, %v806_v0   ;;  %664 = vmatpush3.bf16.msra.mxu1 %v723_v3 }
   0x5   :  { %665 = vmatprep.subr.bf16.mxu1 %v762_v4  ;;  %679 = vmatprep.mubr.msk.bf16.mxu1 %vm763_vm0, %v762_v4 }
   0x6   :  { %139 = vperm.xlu0 %716, %v26_v2  }
   0x8   :  { %203 = vperm.xlu1 %717, %v822_v6   ;;  %666 = vmatpush3.bf16.msra.mxu1 %v724_v7 }
   0x9   :  { %667 = vmatprep.subr.bf16.mxu1 %v762_v4 }
   0xa   :  { %11 = vsyncpa [#allocation3], 0  ;;  %v726_v9 = vld [vmem:[%s959_s3 + $0x20] sm:$0xff]   ;;  %v727_v10 = vld [vmem:[%s959_s3 + $0x18] sm:$0xff]   ;;  %vm152_vm1 = vcmask 130048   ;;  %vm442_vm2 = vcmask 1045504  }
   0xb   :  { %v728_v11 = vld [vmem:[%s959_s3 + $0x10] sm:$0xff]   ;;  %v562_v12 = vld [vmem:[%s956_s0] sm:$0xff]   ;;  %v621_v13 = vld [vmem:[%s956_s0 + $0x8] sm:$0xff]   ;;  %vm438_vm3 = vcmask 97280   ;;  %s767_s21 = smov [#allocation2]  }
   0xc   :  { %668 = vmatpush3.bf16.msra.mxu1 %v725_v8  ;;  %v563_v14 = vunpack.c.l.bf16 %v562_v12  ;;  %v567_v15 = vunpack.c.l.bf16 %v621_v13  ;;  %v564_v16 = vunpack.c.h.bf16 %v562_v12  ;;  %v568_v17 = vunpack.c.h.bf16 %v621_v13  ;;  %v622_v18 = vld [vmem:[%s956_s0 + $0x10] sm:$0xff]   ;;  %v623_v23 = vld [vmem:[%s956_s0 + $0x18] sm:$0xff]   ;;  %v624_v28 = vld [vmem:[%s956_s0 + $0x20] sm:$0xff]   ;;  %s504_s22 = sshll.u32 %s767_s21, 4  ;;  %s505_s22 = int_to_ptr.vmem [resolvable:$true] %s504_s22 }
   0xd   :  { %669 = vmatprep.subr.bf16.mxu1 %v762_v4  ;;  %v571_v20 = vunpack.c.l.bf16 %v622_v18  ;;  %v572_v22 = vunpack.c.h.bf16 %v622_v18  ;;  %v575_v25 = vunpack.c.l.bf16 %v623_v23  ;;  %v576_v27 = vunpack.c.h.bf16 %v623_v23  ;;  %v625_v33 = vld [vmem:[%s956_s0 + $0x28] sm:$0xff]   ;;  %v626_v38 = vld [vmem:[%s956_s0 + $0x30] sm:$0xff]   ;;  %v627_v43 = vld [vmem:[%s956_s0 + $0x38] sm:$0xff]   ;;  %p744_p1 = scmp.lt.s32.totalorder %s505_s22, %s505_s22 }
   0xe   :  { %v39_v19 = vadd.f32 %v567_v15, %v563_v14  ;;  %v40_v21 = vadd.f32 %v568_v17, %v564_v16  ;;  %v579_v30 = vunpack.c.l.bf16 %v624_v28  ;;  %v580_v32 = vunpack.c.h.bf16 %v624_v28  ;;  %v628_v48 = vld [vmem:[%s956_s0 + $0x40] sm:$0xff]   ;;  %v629_v53 = vld [vmem:[%s956_s0 + $0x48] sm:$0xff]   ;;  %v630_v58 = vld [vmem:[%s956_s0 + $0x50] sm:$0xff]  }
   0xf   :  { %v583_v35 = vunpack.c.l.bf16 %v625_v33  ;;  %v584_v37 = vunpack.c.h.bf16 %v625_v33  ;;  %v587_v40 = vunpack.c.l.bf16 %v626_v38  ;;  %v588_v42 = vunpack.c.h.bf16 %v626_v38  ;;  %v631_v63 = vld [vmem:[%s956_s0 + $0x58] sm:$0xff]   ;;  %v632_v7 = vld [vmem:[%s956_s0 + $0x60] sm:$0xff]   ;;  %v633_v12 = vld [vmem:[%s956_s0 + $0x68] sm:$0xff]  }
  0x10   :  { %670 = vmatpush3.bf16.msra.mxu1 %v726_v9  ;;  %v46_v24 = vadd.f32 %v571_v20, %v39_v19  ;;  %v47_v26 = vadd.f32 %v572_v22, %v40_v21  ;;  %v591_v45 = vunpack.c.l.bf16 %v627_v43  ;;  %v592_v47 = vunpack.c.h.bf16 %v627_v43  ;;  %v634_v17 = vld [vmem:[%s956_s0 + $0x70] sm:$0xff]   ;;  %s739_s0 = scalar_lea.vmem %s505_s22, 128 }
  0x11   :  { %671 = vmatprep.subr.bf16.mxu1 %v762_v4  ;;  %v595_v50 = vunpack.c.l.bf16 %v628_v48  ;;  %v596_v52 = vunpack.c.h.bf16 %v628_v48  ;;  %v599_v55 = vunpack.c.l.bf16 %v629_v53  ;;  %v600_v57 = vunpack.c.h.bf16 %v629_v53  ;;  %v732_v33 = vld [vmem:[%s960_s4 + $0x30] sm:$0xff]   ;;  %v738_v48 = vld [vmem:[%s960_s4] sm:$0xff]   ;;  %p740_p0 = scmp.ne.s32.totalorder %s505_s22, %s739_s0  ;;  %p745_p2 = scmp.lt.s32.totalorder %s739_s0, %s739_s0 }
  0x12   :  { %v53_v29 = vadd.f32 %v575_v25, %v46_v24  ;;  %v54_v31 = vadd.f32 %v576_v27, %v47_v26  ;;  %v603_v60 = vunpack.c.l.bf16 %v630_v58  ;;  %v604_v62 = vunpack.c.h.bf16 %v630_v58 }
  0x13   :  { %v607_v2 = vunpack.c.l.bf16 %v631_v63  ;;  %v608_v5 = vunpack.c.h.bf16 %v631_v63  ;;  %v611_v9 = vunpack.c.l.bf16 %v632_v7  ;;  %v615_v14 = vunpack.c.l.bf16 %v633_v12  ;;  %p746_p3 = por %p745_p2, %p744_p1 }
  0x14   :  { %672 = vmatpush3.bf16.msra.mxu1 %v727_v10  ;;  %v60_v34 = vadd.f32 %v579_v30, %v53_v29  ;;  %v61_v36 = vadd.f32 %v580_v32, %v54_v31  ;;  %v616_v16 = vunpack.c.h.bf16 %v633_v12  ;;  %v619_v19 = vunpack.c.l.bf16 %v634_v17  ;;  %v722_v29 = vld [vmem:[%s957_s1] sm:$0x3f]   ;;  %v729_v30 = vld [vmem:[%s959_s3 + $0x8] sm:$0xff]   ;;  %v731_v32 = vld [vmem:[%s960_s4 + $0x38] sm:$0xff]  }
  0x15   :  { %673 = vmatprep.subr.bf16.mxu1 %v762_v4  ;;  %v620_v21 = vunpack.c.h.bf16 %v634_v17  ;;  %v730_v31 = vld [vmem:[%s959_s3] sm:$0xff]   ;;  %p747_p4 = pnand %p746_p3, %p740_p0 }
  0x16   :  { %v67_v39 = vadd.f32 %v583_v35, %v60_v34  ;;  %v68_v41 = vadd.f32 %v584_v37, %v61_v36  ;;  %v733_v34 = vld [vmem:[%s960_s4 + $0x28] sm:$0xff]   ;;  %v734_v35 = vld [vmem:[%s960_s4 + $0x20] sm:$0xff]   ;;  %v735_v36 = vld [vmem:[%s960_s4 + $0x18] sm:$0xff]  }
  0x18   :  { %674 = vmatpush3.bf16.msra.mxu1 %v728_v11  ;;  %v74_v44 = vadd.f32 %v587_v40, %v67_v39  ;;  %v75_v46 = vadd.f32 %v588_v42, %v68_v41  ;;  %v612_v11 = vunpack.c.h.bf16 %v632_v7 }
  0x19   :  { %675 = vmatprep.subr.bf16.mxu1 %v762_v4 }
  0x1a   :  { %v81_v49 = vadd.f32 %v591_v45, %v74_v44  ;;  %v82_v51 = vadd.f32 %v592_v47, %v75_v46  ;;  %v736_v46 = vld [vmem:[%s960_s4 + $0x10] sm:$0xff]   ;;  %v737_v47 = vld [vmem:[%s960_s4 + $0x8] sm:$0xff]  }
  0x1c   :  { %v88_v54 = vadd.f32 %v595_v50, %v81_v49  ;;  %v89_v56 = vadd.f32 %v596_v52, %v82_v51  ;;  %676 = vmatpush3.bf16.msra.mxu1 %v729_v30  ;;  %v765_v49 = vmov 2   ;;  %v542_v50 = vld [vmem:[%s961_s5 + $0x10] ss:$0 sm:$0xff] }
  0x1d   :  { %677 = vmatprep.subr.bf16.mxu1 %v762_v4  ;;  %718 = vset.pattern.permute.xlu0 %v765_v49 }
  0x1e   :  { %v95_v59 = vadd.f32 %v599_v55, %v88_v54  ;;  %v96_v61 = vadd.f32 %v600_v57, %v89_v56  ;;  %719 = vset.pattern.permute.xlu1 %v765_v49  ;;  %427 = vperm.xlu0 %718, %v806_v0  }
  0x1f   :  { %431 = vperm.xlu1 %719, %v822_v6  }
  0x20   :  { %v102_v1 = vadd.f32 %v603_v60, %v95_v59  ;;  %v103_v3 = vadd.f32 %v604_v62, %v96_v61  ;;  %678 = vmatpush3.bf16.msra.mxu1 %v730_v31  ;;  %v766_v59 = vmov 3  }
  0x21   :  { %703 = vmatprep.subr.bf16.mxu1 %v762_v4 }
  0x22   :  { %v109_v8 = vadd.f32 %v607_v2, %v102_v1  ;;  %v110_v10 = vadd.f32 %v608_v5, %v103_v3  ;;  %721 = vset.pattern.permute.xlu0 %v766_v59 }
  0x23   :  { %720 = vset.pattern.permute.xlu1 %v766_v59 }
  0x24   :  { %v116_v13 = vadd.f32 %v611_v9, %v109_v8  ;;  %v117_v15 = vadd.f32 %v612_v11, %v110_v10  ;;  %487 = vperm.xlu1 %720, %v806_v0   ;;  %v437_v8 = vld [vmem:[%s958_s2] sm:$0xf]  ;;  %v560_v10 = vld [vmem:[%s961_s5 + $0x11] ss:$0 sm:$0xff] }
  0x26   :  { %v123_v18 = vadd.f32 %v615_v14, %v116_v13  ;;  %v124_v20 = vadd.f32 %v616_v16, %v117_v15 }
  0x28   :  { %v130_v23 = vadd.f32 %v619_v19, %v123_v18  ;;  %v131_v24 = vadd.f32 %v620_v21, %v124_v20 }
  0x7d   :  { %v135_v22 = vpop.permute.xlu0 %134 }
  0x7e   :  { %v142_v26 = vmul.f32 %v135_v22, %v130_v23 }
  0x7f   :  { %v199_v37 = vpop.permute.xlu1 %198 }
  0x81   :  { %v140_v25 = vpop.permute.xlu0 %139 }
  0x82   :  { %v143_v27 = vmul.f32 %v140_v25, %v131_v24 }
  0x83   :  { %v204_v40 = vpop.permute.xlu1 %203 }
  0x84   :  { %v144_v28 = vpack.c.bf16 %v143_v27, %v142_v26 }
  0x86   :  { %658 = vmatpush3.bf16.msra.mxu0 %v144_v28 }
  0x87   :  { %683 = vmatprep.subr.bf16.mxu0 %v762_v4 }
  0x89   :  { %660 = vmatmul.mubr.msk.bf16.vlgmr.msra.gmra.mxu0 %vm152_vm1, %v722_v29 }
  0x8a   :  { %699 = vmatprep.mubr.msk.bf16.mxu0 %vm763_vm0, %v762_v4  ;;  %684 = vmatpush3.bf16.msra.mxu0 %v731_v32 }
  0x8b   :  { %685 = vmatprep.subr.bf16.mxu0 %v762_v4 }
  0x8e   :  { %686 = vmatpush3.bf16.msra.mxu0 %v732_v33 }
  0x8f   :  { %687 = vmatprep.subr.bf16.mxu0 %v762_v4 }
  0x92   :  { %688 = vmatpush3.bf16.msra.mxu0 %v733_v34 }
  0x93   :  { %689 = vmatprep.subr.bf16.mxu0 %v762_v4 }
  0x96   :  { %690 = vmatpush3.bf16.msra.mxu0 %v734_v35 }
  0x97   :  { %691 = vmatprep.subr.bf16.mxu0 %v762_v4 }
  0x99   :  { %v428_v60 = vpop.permute.xlu0 %427 }
  0x9a   :  { %692 = vmatpush3.bf16.msra.mxu0 %v735_v36  ;;  %v432_v62 = vpop.permute.xlu1 %431 }
  0x9b   :  { %693 = vmatprep.subr.bf16.mxu0 %v762_v4 }
  0x9e   :  { %694 = vmatpush3.bf16.msra.mxu0 %v736_v46 }
  0x9f   :  { %695 = vmatprep.subr.bf16.mxu0 %v762_v4  ;;  %v488_v9 = vpop.permute.xlu1 %487 }
  0xa2   :  { %696 = vmatpush3.bf16.msra.mxu0 %v737_v47 }
  0xa3   :  { %697 = vmatprep.subr.bf16.mxu0 %v762_v4 }
  0xa6   :  { %698 = vmatpush3.bf16.msra.mxu0 %v738_v48 }
 0x149   :  { %v190_v38 = vpop.f32.mrf.mxu0 }
 0x14a   :  { %v206_v42 = vmul.f32 %v199_v37, %v190_v38 }
 0x14b   :  { %v661_v39 = vpop.f32.mrf.mxu0 }
 0x14d   :  { %v193_v41 = vpop.f32.mrf.mxu0 }
 0x14e   :  { %v207_v43 = vmul.f32 %v204_v40, %v193_v41 }
 0x14f   :  { %v662_v44 = vpop.f32.mrf.mxu0 }
 0x150   :  { %v208_v45 = vpack.c.bf16 %v207_v43, %v206_v42 }
 0x152   :  { %680 = vmatmul.mubr.bf16.vlgmr.msra.gmra.mxu1 %v208_v45 }
 0x153   :  { %705 = vmatprep.mubr.msk.bf16.mxu1 %vm763_vm0, %v762_v4 }
 0x212   :  { %v311_v51 = vpop.f32.mrf.mxu1 }
 0x213   :  { %v312_v53 = vadd.f32 %v542_v50, %v311_v51 }
 0x214   :  { %v681_v52 = vpop.f32.mrf.mxu1 }
 0x215   :  { %v318_v56 = vmax.f32 %v312_v53, 0.0 }
 0x216   :  { %v314_v4 = vpop.f32.mrf.mxu1 }
 0x217   :  { %v315_v54 = vadd.f32 %v542_v50, %v314_v4 }
 0x218   :  { %v682_v55 = vpop.f32.mrf.mxu1 }
 0x219   :  { %v319_v57 = vmax.f32 %v315_v54, 0.0 }
 0x21b   :  { %v320_v58 = vpack.c.bf16 %v319_v57, %v318_v56 }
 0x21d   :  { %700 = vmatmul.mubr.bf16.vlgmr.msra.gmra.mxu0 %v320_v58 }
 0x2dd   :  { %v419_v6 = vpop.f32.mrf.mxu0 }
 0x2de   :  { %v434_v1 = vmul.f32 %v428_v60, %v419_v6 }
 0x2df   :  { %v701_v61 = vpop.f32.mrf.mxu0 }
 0x2e1   :  { %v422_v63 = vpop.f32.mrf.mxu0 }
 0x2e2   :  { %v435_v2 = vmul.f32 %v432_v62, %v422_v63 }
 0x2e3   :  { %v702_v3 = vpop.f32.mrf.mxu0 }
 0x2e4   :  { %v436_v5 = vpack.c.bf16 %v435_v2, %v434_v1 }
 0x2e6   :  { %v444_v7 = vsel %vm442_vm2, %v436_v5, 0 }
 0x2e7   :  { %704 = vmatpush3.bf16.msra.mxu1 %v444_v7 }
 0x2ea   :  { %706 = vmatmul.mubr.msk.bf16.vlgmr.msra.gmra.mxu1 %vm438_vm3, %v437_v8 }
 0x3aa   :  { %v480_v0 = vpop.f32.mrf.mxu1 }
 0x3ab   :  { %v490_v11 = vmul.f32 %v488_v9, %v480_v0 }
 0x3ac   :  { %v707_v12 = vpop.f32.mrf.mxu1 }
 0x3ad   :  { %v495_v13 = vadd.f32 %v560_v10, %v490_v11 }
 0x3ae   :  { %v483_v14 = vpop.f32.mrf.mxu1 }
 0x3af   :  { %v496_v15 = vmax.f32 %v495_v13, 0.0 }
 0x3b0   :  { %v708_v16 = vpop.f32.mrf.mxu1 }
 0x3b1   :  { %497 = vst [vmem:[#allocation2] sm:$0xff] %v496_v15 }
 0x3b2   :  { %750 = shalt.err (!%p747_p4)
}
 0x3b3   :  { %507 = dma.vmem_to_hbm [thread:$0]  %s505_s22, 128, %s962_s6, [#allocation3]  }
 0x3b4   :  { %759 = dma.done.wait [#allocation3], 128  }
 0x3b5   :  { %760 = vsyncadd [#allocation3], 4294967168 }
 0x3b6   :  { %511 = vsyncpa [#allocation3], 1 }

</bundles_post_ra>
